<compile_context>
chip_gen: v5e
topology: v5e:2x2
jax: 0.10.0
libtpu: 0.0.40
codegen_flags: <defaults>
</compile_context>

<pallas_src>
import functools

import jax
import jax.numpy as jnp
from jax.experimental import pallas as pl
from jax.experimental.pallas import tpu as pltpu

_LANE = 128  # lane width: feature dims padded to multiples of this


def _round_up(x, m):
    return ((x + m - 1) // m) * m


def _mlp_fused_kernel(x_ref, w_ref, b_ref, o_ref, h_scratch, *,
                      num_layers: int, in_dim: int, out_dim: int):
    """Whole MLP in one kernel invocation (layer loop unrolled at trace time).

    x_ref     : (M, in_dim)         f32   unpadded input (full-array block)
    w_ref     : (L, D_pad, D_pad)   bf16  packed, zero-padded weight slab
    b_ref     : (L, D_pad)          f32   packed, zero-padded bias slab
    o_ref     : (M, out_dim)        f32   exact output (no wrapper slice)
    h_scratch : (M, D_pad)          f32   VMEM scratch to lane-pad activations
    """
    # Lane-pad the activations on-chip: zero the scratch, drop x into the
    # first in_dim lanes. Padded lanes stay exactly 0 through every layer.
    h_scratch[...] = jnp.zeros_like(h_scratch)
    h_scratch[:, :in_dim] = x_ref[...]
    h = h_scratch[...]                                      # (M, D_pad) f32

    for i in range(num_layers):                             # unrolled
        w = w_ref[i]                                        # (D_pad, D_pad) bf16
        b = b_ref[i:i + 1, :]                               # (1, D_pad)     f32
        y = jnp.dot(h.astype(jnp.bfloat16), w,
                    preferred_element_type=jnp.float32)     # MXU, f32 accumulate
        y = y + b                                           # f32 epilogue (v5e-safe)
        if i < num_layers - 1:
            y = jnp.maximum(y, 0.0)                         # ReLU
        h = y

    # Exact-width store: tiny masked store instead of a wrapper-side slice op.
    o_ref[...] = h[:, :out_dim].astype(o_ref.dtype)


def pallas_mlp_forward(x, w_slab, b_slab, *, num_layers: int, out_dim: int):
    """Fused forward pass: one grid-free pallas_call for the whole MLP."""
    M, in_dim = x.shape
    _, d_pad, _ = w_slab.shape

    kernel = functools.partial(
        _mlp_fused_kernel, num_layers=num_layers, in_dim=in_dim, out_dim=out_dim)

    flops = 2 * M * num_layers * d_pad * d_pad
    bytes_accessed = (x.size * x.dtype.itemsize
                      + w_slab.size * w_slab.dtype.itemsize
                      + b_slab.size * b_slab.dtype.itemsize
                      + M * out_dim * x.dtype.itemsize)

    return pl.pallas_call(
        kernel,
        out_shape=jax.ShapeDtypeStruct((M, out_dim), x.dtype),
        # Grid-free call: everything is VMEM-resident; nothing to pipeline at
        # these sizes, so no BlockSpec tiling / double-buffering bookkeeping.
        in_specs=[pl.BlockSpec(memory_space=pltpu.MemorySpace.VMEM)] * 3,
        out_specs=pl.BlockSpec(memory_space=pltpu.MemorySpace.VMEM),
        scratch_shapes=[pltpu.VMEM((M, d_pad), jnp.float32)],
        cost_estimate=pl.CostEstimate(
            flops=flops, transcendentals=0, bytes_accessed=bytes_accessed),
    )(x, w_slab, b_slab)


class MLP_BNE:
    """JAX/Pallas port of the PyTorch MLP_BNE module (fully fused forward)."""

    def __init__(self, input_dim, hidden_dim, output_dim, num_layers, key):
        self.num_layers = num_layers
        self.output_dim = output_dim
        h = [hidden_dim] * (num_layers - 1)
        dims = list(zip([input_dim] + h, h + [output_dim]))

        # One common padded feature width for every layer so all weights pack
        # into a single contiguous slab (and activations keep one width).
        d_pad = _round_up(max(input_dim, hidden_dim, output_dim), _LANE)

        w_slab = jnp.zeros((num_layers, d_pad, d_pad), jnp.float32)
        b_slab = jnp.zeros((num_layers, d_pad), jnp.float32)

        self.params = []  # unpadded f32 (reference / PyTorch-equivalent)
        for i, (n_in, n_out) in enumerate(dims):
            key, wk, bk = jax.random.split(key, 3)
            # PyTorch nn.Linear default init: U(-1/sqrt(fan_in), 1/sqrt(fan_in))
            bound = 1.0 / (n_in ** 0.5)
            # Weight stored already transposed: (in, out) so kernel does x @ W.
            w = jax.random.uniform(wk, (n_in, n_out), jnp.float32,
                                   minval=-bound, maxval=bound)
            b = jax.random.uniform(bk, (n_out,), jnp.float32,
                                   minval=-bound, maxval=bound)
            self.params.append((w, b))
            w_slab = w_slab.at[i, :n_in, :n_out].set(w)
            b_slab = b_slab.at[i, :n_out].set(b)

        # bf16 weights (halved DMA/VMEM bytes, fewer MXU passes); f32 biases.
        self.w_slab = w_slab.astype(jnp.bfloat16)
        self.b_slab = b_slab

    def __call__(self, x):
        return pallas_mlp_forward(
            x, self.w_slab, self.b_slab,
            num_layers=self.num_layers, out_dim=self.output_dim)


if __name__ == "__main__":
    key = jax.random.PRNGKey(0)
    key, xk, mk = jax.random.split(key, 3)

    batch = 8
    input_dim = 32
    hidden_dim = 64
    output_dim = 16
    num_layers = 3

    x = jax.random.normal(xk, (batch, input_dim), jnp.float32)
    mlp = MLP_BNE(input_dim, hidden_dim, output_dim, num_layers, mk)

    out = jax.block_until_ready(mlp(x))

    # Pure-JAX f32 reference of the same forward pass (unpadded params).
    ref = x
    for i, (w, b) in enumerate(mlp.params):
        ref = ref @ w + b
        if i < num_layers - 1:
            ref = jnp.maximum(ref, 0.0)

    assert out.shape == (batch, output_dim)
    # Kernel uses bf16 weights (f32 accumulation), so compare with a looser
    # tolerance against the pure-f32 reference.
    assert jnp.allclose(out, ref, atol=5e-2, rtol=5e-2), float(
        jnp.max(jnp.abs(out - ref)))

    print("KERNEL_OK")
</pallas_src>

<mosaic_0001>
module attributes {stable_mosaic.version = 11 : i64} {
  func.func @_mlp_fused_kernel(%arg0: memref<8x32xf32, #tpu.memory_space<vmem>>, %arg1: memref<3x128x128xbf16, #tpu.memory_space<vmem>>, %arg2: memref<3x128xf32, #tpu.memory_space<vmem>>, %arg3: memref<8x16xf32, #tpu.memory_space<vmem>>, %arg4: memref<8x128xf32, #tpu.memory_space<vmem>>) attributes {dimension_semantics = [], scalar_prefetch = 0 : i64, scratch_operands = 1 : i64, tpu.core_type = #tpu.core_type<tc>} {
    %cst = arith.constant 0.000000e+00 : f32
    %0 = vector.broadcast %cst : f32 to vector<8x128xf32>
    %c0 = arith.constant 0 : index
    %c0_0 = arith.constant 0 : index
    %1 = vector.load %arg4[%c0, %c0_0] : memref<8x128xf32, #tpu.memory_space<vmem>>, vector<8x128xf32>
    tpu.vector_store %arg4[%c0, %c0_0], %0 {strides = array<i32>} : memref<8x128xf32, #tpu.memory_space<vmem>>, vector<8x128xf32>,
    %c0_1 = arith.constant 0 : index
    %c0_2 = arith.constant 0 : index
    %2 = vector.load %arg0[%c0_1, %c0_2] : memref<8x32xf32, #tpu.memory_space<vmem>>, vector<8x32xf32>
    %c0_3 = arith.constant 0 : index
    %c0_4 = arith.constant 0 : index
    %3 = vector.load %arg4[%c0_3, %c0_4] : memref<8x128xf32, #tpu.memory_space<vmem>>, vector<8x32xf32>
    tpu.vector_store %arg4[%c0_3, %c0_4], %2 {strides = array<i32>} : memref<8x128xf32, #tpu.memory_space<vmem>>, vector<8x32xf32>,
    %c0_5 = arith.constant 0 : index
    %c0_6 = arith.constant 0 : index
    %4 = vector.load %arg4[%c0_5, %c0_6] : memref<8x128xf32, #tpu.memory_space<vmem>>, vector<8x128xf32>
    %c0_7 = arith.constant 0 : index
    %c0_8 = arith.constant 0 : index
    %c0_9 = arith.constant 0 : index
    %5 = vector.load %arg1[%c0_7, %c0_8, %c0_9] : memref<3x128x128xbf16, #tpu.memory_space<vmem>>, vector<1x128x128xbf16>
    %6 = vector.shape_cast %5 : vector<1x128x128xbf16> to vector<128x128xbf16>
    %c0_10 = arith.constant 0 : index
    %c0_11 = arith.constant 0 : index
    %7 = vector.load %arg2[%c0_10, %c0_11] : memref<3x128xf32, #tpu.memory_space<vmem>>, vector<1x128xf32>
    %8 = arith.truncf %4 : vector<8x128xf32> to vector<8x128xbf16>
    %cst_12 = arith.constant dense<0.000000e+00> : vector<8x128xf32>
    %9 = tpu.matmul %8, %6, %cst_12 {dimension_numbers = #tpu.dot_dimension_numbers<[1], [0], [0], [1], [0, 0, 1, 1], [], []>} : vector<8x128xbf16>, vector<128x128xbf16>, vector<8x128xf32> -> vector<8x128xf32>
    %10 = vector.broadcast %7 : vector<1x128xf32> to vector<8x128xf32>
    %11 = arith.addf %9, %10 : vector<8x128xf32>
    %cst_13 = arith.constant 0.000000e+00 : f32
    %12 = vector.broadcast %cst_13 : f32 to vector<8x128xf32>
    %13 = arith.maximumf %11, %12 : vector<8x128xf32>
    %c1 = arith.constant 1 : index
    %c0_14 = arith.constant 0 : index
    %c0_15 = arith.constant 0 : index
    %14 = vector.load %arg1[%c1, %c0_14, %c0_15] : memref<3x128x128xbf16, #tpu.memory_space<vmem>>, vector<1x128x128xbf16>
    %15 = vector.shape_cast %14 : vector<1x128x128xbf16> to vector<128x128xbf16>
    %c1_16 = arith.constant 1 : index
    %c0_17 = arith.constant 0 : index
    %16 = vector.load %arg2[%c1_16, %c0_17] : memref<3x128xf32, #tpu.memory_space<vmem>>, vector<1x128xf32>
    %17 = arith.truncf %13 : vector<8x128xf32> to vector<8x128xbf16>
    %cst_18 = arith.constant dense<0.000000e+00> : vector<8x128xf32>
    %18 = tpu.matmul %17, %15, %cst_18 {dimension_numbers = #tpu.dot_dimension_numbers<[1], [0], [0], [1], [0, 0, 1, 1], [], []>} : vector<8x128xbf16>, vector<128x128xbf16>, vector<8x128xf32> -> vector<8x128xf32>
    %19 = vector.broadcast %16 : vector<1x128xf32> to vector<8x128xf32>
    %20 = arith.addf %18, %19 : vector<8x128xf32>
    %cst_19 = arith.constant 0.000000e+00 : f32
    %21 = vector.broadcast %cst_19 : f32 to vector<8x128xf32>
    %22 = arith.maximumf %20, %21 : vector<8x128xf32>
    %c2 = arith.constant 2 : index
    %c0_20 = arith.constant 0 : index
    %c0_21 = arith.constant 0 : index
    %23 = vector.load %arg1[%c2, %c0_20, %c0_21] : memref<3x128x128xbf16, #tpu.memory_space<vmem>>, vector<1x128x128xbf16>
    %24 = vector.shape_cast %23 : vector<1x128x128xbf16> to vector<128x128xbf16>
    %c2_22 = arith.constant 2 : index
    %c0_23 = arith.constant 0 : index
    %25 = vector.load %arg2[%c2_22, %c0_23] : memref<3x128xf32, #tpu.memory_space<vmem>>, vector<1x128xf32>
    %26 = arith.truncf %22 : vector<8x128xf32> to vector<8x128xbf16>
    %cst_24 = arith.constant dense<0.000000e+00> : vector<8x128xf32>
    %27 = tpu.matmul %26, %24, %cst_24 {dimension_numbers = #tpu.dot_dimension_numbers<[1], [0], [0], [1], [0, 0, 1, 1], [], []>} : vector<8x128xbf16>, vector<128x128xbf16>, vector<8x128xf32> -> vector<8x128xf32>
    %28 = vector.broadcast %25 : vector<1x128xf32> to vector<8x128xf32>
    %29 = arith.addf %27, %28 : vector<8x128xf32>
    %30 = vector.extract_strided_slice %29 {offsets = [0, 0], sizes = [8, 16], strides = [1, 1]} : vector<8x128xf32> to vector<8x16xf32>
    %c0_25 = arith.constant 0 : index
    %c0_26 = arith.constant 0 : index
    %31 = vector.load %arg3[%c0_25, %c0_26] : memref<8x16xf32, #tpu.memory_space<vmem>>, vector<8x16xf32>
    tpu.vector_store %arg3[%c0_25, %c0_26], %30 {strides = array<i32>} : memref<8x16xf32, #tpu.memory_space<vmem>>, vector<8x16xf32>,
    return
  }
}

</mosaic_0001>

<bundles_post_ra>
// kernel: tpu_custom_call.1
= control target key start
LH: loop header
LB: loop body
LE: loop exit
PB: predicated region body
PF: predicated region fallthrough
CT: control target
= control target key end

     0   :  { %8 = vsyncpa [#allocation4], 0  ;;  %s598_s0 = inlined_call_operand.hbm [shape: f32[8,32], index: 0, kind: input, shape index: {}]   ;;  %s599_s1 = inlined_call_operand.hbm [shape: bf16[3,128,128], index: 1, kind: input, shape index: {}]   ;;  %s600_s2 = inlined_call_operand.hbm [shape: f32[3,128], index: 2, kind: input, shape index: {}]   ;;  %s601_s3 = inlined_call_operand.hbm [shape: f32[8,16], index: 3, kind: output, shape index: {}]  }
   0x1   :  { %9 = vsyncpa [#allocation7], 0  ;;  %s26_s14 = sshll.u32 %s599_s1, 4  ;;  %s27_s14 = int_to_ptr.hbm [resolvable:$true] %s26_s14 }
   0x2   :  { %10 = vsyncpa [#allocation5], 0  ;;  %s559_s15 = smov [#allocation6]   ;;  %s16_s19 = sshll.u32 %s598_s0, 4  ;;  %s17_s19 = int_to_ptr.hbm [resolvable:$true] %s16_s19 }
   0x3   :  { %s28_s16 = sshll.u32 %s559_s15, 4  ;;  %s560_s20 = smov 64   ;;  %s29_s16 = int_to_ptr.vmem [resolvable:$true] %s28_s16 }
   0x4   :  { %s561_s21 = smov 4   ;;  %s562_s22 = smov [#allocation3]  }
   0x5   :  { %34 = dma.hbm_to_vmem [thread:$0]  %s27_s14, 3072, %s29_s16, [#allocation7], %s560_s20, %s560_s20, %s561_s21  }
   0x6   :  { %s18_s23 = sshll.u32 %s562_s22, 4  ;;  %s40_s26 = sshll.u32 %s600_s2, 4  ;;  %s19_s23 = int_to_ptr.vmem [resolvable:$true] %s18_s23  ;;  %s41_s26 = int_to_ptr.hbm [resolvable:$true] %s40_s26 }
   0x7   :  { %21 = dma.hbm_to_vmem [thread:$0]  %s17_s19, 128, %s19_s23, [#allocation4]  }
   0x8   :  { %s563_s1 = smov [#allocation8]  }
   0x9   :  { %s42_s27 = sshll.u32 %s563_s1, 4  ;;  %s43_s27 = int_to_ptr.vmem [resolvable:$true] %s42_s27 }
   0xa   :  { %45 = dma.hbm_to_vmem [thread:$0]  %s41_s26, 64, %s43_s27, [#allocation7]  }
   0xb   :  { %553 = dma.done.wait [#allocation4], 128  }
   0xc   :  { %554 = vsyncadd [#allocation4], 4294967168 }
   0xd   :  { %555 = dma.done.wait [#allocation7], 3136  }
   0xe   :  { %556 = vsyncadd [#allocation7], 4294964160  ;;  %v564_v0 = vmov 0.0   ;;  %v430_v1 = vld [vmem:[#allocation6 + $0x38] sm:$0xff]  ;;  %vm60_vm0 = vcmask 261120   ;;  %v429_v2 = vld [vmem:[#allocation6 + $0x30] sm:$0xff] }
   0xf   :  { %58 = vst [vmem:[#allocation2] sm:$0xff] %v564_v0  ;;  %130 = vmatpush.bf16.msra.mxu0 %v430_v1  ;;  %v59_v3 = vld [vmem:[#allocation3] sm:$0xff]  ;;  %v437_v5 = vld [vmem:[#allocation6 + $0x70] sm:$0xff]  ;;  %v428_v6 = vld [vmem:[#allocation6 + $0x28] sm:$0xff]  ;;  %s565_s0 = smov [#allocation9]   ;;  %s316_s30 = sshll.u32 %s601_s3, 4  ;;  %s317_s30 = int_to_ptr.hbm [resolvable:$true] %s316_s30 }
  0x10   :  { %61 = vst.msk [vmem:[#allocation2] sm:$0xff] %vm60_vm0, %v59_v3  ;;  %v438_v4 = vld [vmem:[#allocation6 + $0x78] sm:$0xff]  ;;  %v436_v7 = vld [vmem:[#allocation6 + $0x68] sm:$0xff]  ;;  %v427_v8 = vld [vmem:[#allocation6 + $0x20] sm:$0xff]  ;;  %s314_s2 = sshll.u32 %s565_s0, 4  ;;  %vm307_vm1 = vcmask 130048   ;;  %s315_s2 = int_to_ptr.vmem [resolvable:$true] %s314_s2 }
  0x11   :  { %212 = vmatpush.bf16.msra.mxu1 %v438_v4  ;;  %v435_v9 = vld [vmem:[#allocation6 + $0x60] sm:$0xff]  ;;  %v426_v10 = vld [vmem:[#allocation6 + $0x18] sm:$0xff]  ;;  %v425_v12 = vld [vmem:[#allocation6 + $0x10] sm:$0xff] }
  0x12   :  { %v434_v11 = vld [vmem:[#allocation6 + $0x58] sm:$0xff]  ;;  %v433_v13 = vld [vmem:[#allocation6 + $0x50] sm:$0xff]  ;;  %v424_v14 = vld [vmem:[#allocation6 + $0x8] sm:$0xff] }
  0x13   :  { %131 = vmatpush.bf16.msra.mxu0 %v429_v2  ;;  %v423_v15 = vld [vmem:[#allocation6] sm:$0xff]  ;;  %v432_v18 = vld [vmem:[#allocation6 + $0x48] sm:$0xff]  ;;  %v446_v20 = vld [vmem:[#allocation6 + $0xb8] sm:$0xff] }
  0x14   :  { %v431_v19 = vld [vmem:[#allocation6 + $0x40] sm:$0xff]  ;;  %294 = vmatpush.bf16.msra.mxu2 %v446_v20  ;;  %v445_v21 = vld [vmem:[#allocation6 + $0xb0] sm:$0xff]  ;;  %v444_v22 = vld [vmem:[#allocation6 + $0xa8] sm:$0xff] }
  0x15   :  { %213 = vmatpush.bf16.msra.mxu1 %v437_v5  ;;  %v443_v23 = vld [vmem:[#allocation6 + $0xa0] sm:$0xff]  ;;  %v442_v24 = vld [vmem:[#allocation6 + $0x98] sm:$0xff]  ;;  %v441_v25 = vld [vmem:[#allocation6 + $0x90] sm:$0xff] }
  0x16   :  { %v454_v26 = vld [vmem:[#allocation8] ss:$0 sm:$0xff]  ;;  %v440_v32 = vld [vmem:[#allocation6 + $0x88] sm:$0xff]  ;;  %v455_v34 = vld [vmem:[#allocation8 + $0x1] ss:$0 sm:$0xff] }
  0x17   :  { %132 = vmatpush.bf16.msra.mxu0 %v428_v6  ;;  %v62_v16 = vld [vmem:[#allocation2] sm:$0xff]  ;;  %v439_v33 = vld [vmem:[#allocation6 + $0x80] sm:$0xff] }
  0x18   :  { %v80_v17 = vpack.c.bf16 %v62_v16, %v62_v16  ;;  %295 = vmatpush.bf16.msra.mxu2 %v445_v21  ;;  %v456_v40 = vld [vmem:[#allocation8 + $0x2] ss:$0 sm:$0xff] }
  0x19   :  { %214 = vmatpush.bf16.msra.mxu1 %v436_v7 }
  0x1b   :  { %133 = vmatpush.bf16.msra.mxu0 %v427_v8 }
  0x1c   :  { %296 = vmatpush.bf16.msra.mxu2 %v444_v22 }
  0x1d   :  { %215 = vmatpush.bf16.msra.mxu1 %v435_v9 }
  0x1f   :  { %134 = vmatpush.bf16.msra.mxu0 %v426_v10 }
  0x20   :  { %297 = vmatpush.bf16.msra.mxu2 %v443_v23 }
  0x21   :  { %216 = vmatpush.bf16.msra.mxu1 %v434_v11 }
  0x23   :  { %135 = vmatpush.bf16.msra.mxu0 %v425_v12 }
  0x24   :  { %298 = vmatpush.bf16.msra.mxu2 %v442_v24 }
  0x25   :  { %217 = vmatpush.bf16.msra.mxu1 %v433_v13 }
  0x27   :  { %136 = vmatpush.bf16.msra.mxu0 %v424_v14 }
  0x28   :  { %299 = vmatpush.bf16.msra.mxu2 %v441_v25 }
  0x29   :  { %218 = vmatpush.bf16.msra.mxu1 %v432_v18 }
  0x2b   :  { %137 = vmatpush.bf16.msra.mxu0 %v423_v15 }
  0x2c   :  { %300 = vmatpush.bf16.msra.mxu2 %v440_v32 }
  0x2d   :  { %219 = vmatpush.bf16.msra.mxu1 %v431_v19 }
  0x2e   :  { %138 = vmatmul.bf16.vlgmr.msra.gmra.mxu0 %v80_v17 }
  0x30   :  { %301 = vmatpush.bf16.msra.mxu2 %v439_v33 }
  0xab   :  { %v139_v27 = vpop.f32.mrf.mxu0 }
  0xac   :  { %v140_v28 = vadd.f32 %v454_v26, %v139_v27 }
  0xae   :  { %v143_v29 = vmax.f32 %v140_v28, 0.0 }
  0xb0   :  { %v162_v30 = vpack.c.bf16 %v143_v29, %v143_v29 }
  0xb2   :  { %220 = vmatmul.bf16.vlgmr.msra.gmra.mxu1 %v162_v30 }
  0xb3   :  { %v141_v31 = vpop.f32.mrf.mxu0 }
 0x12f   :  { %v221_v35 = vpop.f32.mrf.mxu1 }
 0x130   :  { %v222_v36 = vadd.f32 %v455_v34, %v221_v35 }
 0x132   :  { %v225_v37 = vmax.f32 %v222_v36, 0.0 }
 0x134   :  { %v244_v38 = vpack.c.bf16 %v225_v37, %v225_v37 }
 0x136   :  { %302 = vmatmul.bf16.vlgmr.msra.gmra.mxu2 %v244_v38 }
 0x137   :  { %v223_v39 = vpop.f32.mrf.mxu1 }
 0x1b9   :  { %v303_v41 = vpop.f32.mrf.mxu2 }
 0x1ba   :  { %v304_v42 = vadd.f32 %v456_v40, %v303_v41 }
 0x1bc   :  { %308 = vst.msk [vmem:[#allocation9] sm:$0xff] %vm307_vm1, %v304_v42 }
 0x1bd   :  { %319 = dma.vmem_to_hbm [thread:$0]  %s315_s2, 128, %s317_s30, [#allocation5]  }
 0x1c1   :  { %v305_v43 = vpop.f32.mrf.mxu2 }
 0x1c2   :  { %557 = dma.done.wait [#allocation5], 128  }
 0x1c3   :  { %558 = vsyncadd [#allocation5], 4294967168 }
 0x1c4   :  { %324 = vsyncpa [#allocation4], 1 }
 0x1c5   :  { %325 = vsyncpa [#allocation7], 1 }
 0x1c6   :  { %326 = vsyncpa [#allocation5], 1 }

</bundles_post_ra>
